<compile_context>
chip_gen: v6e
topology: v6e:2x2x1
jax: 0.10.0
libtpu: 0.0.40
codegen_flags: <defaults>
</compile_context>

<pallas_src>
import functools
from typing import NamedTuple

import jax
import jax.numpy as jnp
from jax import lax
from jax.experimental import pallas as pl
from jax.experimental.pallas import tpu as pltpu


def _round_up(a, m):
    return (a + m - 1) // m * m


class RNNParams(NamedTuple):
    wx: jax.Array        # (I,    Npad)  fused weight, input rows
    wh: jax.Array        # (Hpad, Npad)  fused weight, hidden rows (lane/row padded)
    b: jax.Array         # (1,    Npad)  fused bias (f32)
    input_size: int
    hidden_size: int
    output_size: int
    h_pad: int           # round_up(H, 128)
    o_pad: int           # round_up(O, 128)


def prepare_params(w1, b1, w2, b2, input_size, compute_dtype=jnp.float32):
    """Fuse + pad the two Linear layers once (outside any time loop).

    Weights are (in_features, out_features), i.e. already transposed relative
    to torch.nn.Linear, so forward is x @ W + b.
      w1: (I+H, O), b1: (1, O)   -- b1_linear (output head, log-softmax)
      w2: (I+H, H), b2: (1, H)   -- b2_linear (hidden head, tanh)
    Fused column layout: [hidden(H) | pad -> Hpad | output(O) | pad -> Npad].
    """
    b1 = jnp.asarray(b1).reshape(1, -1)
    b2 = jnp.asarray(b2).reshape(1, -1)
    H = w2.shape[1]
    O = w1.shape[1]
    Hp = _round_up(H, 128)
    Op = _round_up(O, 128)
    Np = Hp + Op
    IH = input_size + H

    w = jnp.zeros((IH, Np), jnp.float32)
    w = w.at[:, :H].set(w2.astype(jnp.float32))
    w = w.at[:, Hp:Hp + O].set(w1.astype(jnp.float32))
    bias = jnp.zeros((1, Np), jnp.float32)
    bias = bias.at[:, :H].set(b2.astype(jnp.float32))
    bias = bias.at[:, Hp:Hp + O].set(b1.astype(jnp.float32))

    wx = w[:input_size].astype(compute_dtype)                     # (I, Np)
    wh = jnp.zeros((Hp, Np), jnp.float32).at[:H].set(w[input_size:])
    wh = wh.astype(compute_dtype)                                 # (Hp, Np)
    return RNNParams(wx, wh, bias, input_size, H, O, Hp, Op)


def _rnn_kernel(x_ref, h0_ref, wx_ref, wh_ref, b_ref, out_ref, hT_ref, h_scr,
                *, output_size, h_pad, time_chunk, seq_len, guard_tail):
    """TT RNN steps on one batch tile.

    Lane layout of the fused accumulator (tb, Hpad + Opad):
      lanes [0, Hpad)        : tanh branch  (carried hidden state)
      lanes [Hpad, Hpad+Opad): log-softmax branch (per-step output)
    Padded lanes carry exact zeros (zero weight columns / bias / h0 padding).
    """
    tc = pl.program_id(1)

    # Re-initialize the carried hidden state at the first time chunk of every
    # batch tile (time axis is innermost, so tc restarts at 0 per tile).
    @pl.when(tc == 0)
    def _():
        h_scr[...] = h0_ref[...].astype(h_scr.dtype)

    cd = wx_ref.dtype                  # MXU compute dtype (f32 or bf16)
    wx = wx_ref[...]
    wh = wh_ref[...]
    bias = b_ref[...]                  # (1, Npad) f32

    tb = out_ref.shape[1]
    o_pad = out_ref.shape[2]

    # Log-softmax mask over padded output lanes (hoisted out of the loop).
    if o_pad > output_size:
        lane = lax.broadcasted_iota(jnp.int32, (tb, o_pad), 1)
        out_mask = lane < output_size
    else:
        out_mask = None

    # Unrolled time-chunk loop: amortizes grid-step overhead.
    for i in range(time_chunk):
        x = x_ref[i]                   # (tb, I)
        h = h_scr[...]                 # (tb, Hpad) f32 carried state
        acc = (jnp.dot(x.astype(cd), wx, preferred_element_type=jnp.float32)
               + jnp.dot(h.astype(cd), wh, preferred_element_type=jnp.float32)
               + bias)                 # (tb, Npad) f32

        acc_h = acc[:, :h_pad]         # lane-aligned slice (multiple of 128)
        acc_o = acc[:, h_pad:]

        # Numerically stable log-softmax over the real output lanes only.
        logits = acc_o if out_mask is None else jnp.where(out_mask, acc_o, -jnp.inf)
        m = jnp.max(logits, axis=1, keepdims=True)
        lse = m + jnp.log(jnp.sum(jnp.exp(logits - m), axis=1, keepdims=True))
        out_ref[i] = (acc_o - lse).astype(out_ref.dtype)   # lane-dense store

        new_h = jnp.tanh(acc_h)        # EUP work restricted to Hpad lanes
        if guard_tail:
            # Padded tail time steps must not advance the carried state.
            t = tc * time_chunk + i
            new_h = jnp.where(t < seq_len, new_h, h)
        h_scr[...] = new_h             # unmasked (tb, Hpad) carry store

    # Final-hidden output block is grid-invariant along the time axis: it stays
    # resident in VMEM and is written back to HBM once per batch tile.
    hT_ref[...] = h_scr[...]


def vanilla_rnn_rollout(xs, h0, params: RNNParams, *, batch_tile=256,
                        time_chunk=8, out_dtype=jnp.float32,
                        min_batch_tiles=1, vmem_limit_bytes=None):
    """Run the RNN over a whole sequence in ONE pallas_call.

    Args:
      xs: (T, B, input_size) float32
      h0: (B, hidden_size)   float32
      params: fused/padded parameters from prepare_params
    Returns:
      outputs: (T, B, output_size)  log-softmax outputs per step
      hidden : (B, hidden_size)     final hidden state (float32)
    """
    T, B, I = xs.shape
    H, O = params.hidden_size, params.output_size
    Hp, Op = params.h_pad, params.o_pad
    Np = Hp + Op
    assert I == params.input_size

    # Batch tiling: minimize padding; min_batch_tiles=2 feeds both v7x TCs.
    n_tiles = max(pl.cdiv(B, batch_tile), min_batch_tiles)
    tb = _round_up(pl.cdiv(B, n_tiles), 8)
    b_pad = n_tiles * tb

    # Time chunking: TT steps per grid iteration.
    tt = max(1, min(time_chunk, T))
    t_pad = _round_up(T, tt)
    n_chunks = t_pad // tt
    guard_tail = t_pad != T

    if (b_pad != B) or (t_pad != T):
        xs = jnp.pad(xs, ((0, t_pad - T), (0, b_pad - B), (0, 0)))
    h0p = jnp.pad(h0, ((0, b_pad - B), (0, Hp - H)))

    grid = (n_tiles, n_chunks)   # (parallel batch tiles, sequential time chunks)

    cp_kwargs = dict(dimension_semantics=("parallel", "arbitrary"))
    if vmem_limit_bytes is not None:
        cp_kwargs["vmem_limit_bytes"] = vmem_limit_bytes

    kernel = functools.partial(
        _rnn_kernel, output_size=O, h_pad=Hp, time_chunk=tt, seq_len=T,
        guard_tail=guard_tail)

    outputs, hidden = pl.pallas_call(
        kernel,
        out_shape=(
            jax.ShapeDtypeStruct((t_pad, b_pad, Op), out_dtype),   # per-step out
            jax.ShapeDtypeStruct((b_pad, Hp), jnp.float32),        # final hidden
        ),
        grid_spec=pltpu.PrefetchScalarGridSpec(
            num_scalar_prefetch=0,
            grid=grid,
            in_specs=[
                pl.BlockSpec((tt, tb, I), lambda bi, tc: (tc, bi, 0)),  # x chunk
                pl.BlockSpec((tb, Hp),    lambda bi, tc: (bi, 0)),      # h0 tile
                pl.BlockSpec((I, Np),     lambda bi, tc: (0, 0)),       # Wx resident
                pl.BlockSpec((Hp, Np),    lambda bi, tc: (0, 0)),       # Wh resident
                pl.BlockSpec((1, Np),     lambda bi, tc: (0, 0)),       # bias resident
            ],
            out_specs=[
                pl.BlockSpec((tt, tb, Op), lambda bi, tc: (tc, bi, 0)),
                pl.BlockSpec((tb, Hp),     lambda bi, tc: (bi, 0)),
            ],
            scratch_shapes=[pltpu.VMEM((tb, Hp), jnp.float32)],         # carried h
        ),
        compiler_params=pltpu.CompilerParams(**cp_kwargs),
    )(xs, h0p, params.wx, params.wh, params.b)

    return outputs[:T, :B, :O], hidden[:B, :H]


def vanilla_rnn_forward(x, h, params: RNNParams, **kwargs):
    """One RNN time step (matches the PyTorch module's forward)."""
    kwargs.setdefault("time_chunk", 1)
    out_seq, hidden = vanilla_rnn_rollout(x[None], h, params, **kwargs)
    return out_seq[0], hidden


def init_params(key, input_size, hidden_size, output_size):
    """PyTorch-style Linear init U(-1/sqrt(fan_in), 1/sqrt(fan_in)).

    Weights stored as (in_features, out_features): forward is x @ W + b.
    """
    fan_in = input_size + hidden_size
    bound = 1.0 / jnp.sqrt(jnp.float32(fan_in))
    k1, k2, k3, k4 = jax.random.split(key, 4)
    w1 = jax.random.uniform(k1, (fan_in, output_size), jnp.float32, -bound, bound)
    b1 = jax.random.uniform(k2, (1, output_size), jnp.float32, -bound, bound)
    w2 = jax.random.uniform(k3, (fan_in, hidden_size), jnp.float32, -bound, bound)
    b2 = jax.random.uniform(k4, (1, hidden_size), jnp.float32, -bound, bound)
    return w1, b1, w2, b2


def rnn_reference(xs, h0, w1, b1, w2, b2):
    """Pure-JAX reference matching the PyTorch module step-by-step."""
    def step(h, x):
        xh = jnp.concatenate([x, h], axis=1)
        out = jax.nn.log_softmax(xh @ w1 + b1, axis=1)
        h_new = jnp.tanh(xh @ w2 + b2)
        return h_new, out
    hT, outs = lax.scan(step, h0, xs)
    return outs, hT


if __name__ == "__main__":
    batch_size = 8
    input_size = 32
    hidden_size = 32
    output_size = 16
    seq_len = 6

    key = jax.random.PRNGKey(0)
    kx, kh, kp, ks, kb = jax.random.split(key, 5)

    x = jax.random.normal(kx, (batch_size, input_size), jnp.float32)
    h0 = jax.random.normal(kh, (batch_size, hidden_size), jnp.float32)
    w1, b1, w2, b2 = init_params(kp, input_size, hidden_size, output_size)
    xs = jax.random.normal(ks, (seq_len, batch_size, input_size), jnp.float32)

    # Fuse + pad parameters once (outside any time loop).
    params = prepare_params(w1, b1, w2, b2, input_size)

    # ---- 1) single step (matches the PyTorch module's forward) ----
    out, h1 = vanilla_rnn_forward(x, h0, params)
    jax.block_until_ready((out, h1))
    ref_out1, ref_h1 = rnn_reference(x[None], h0, w1, b1, w2, b2)
    assert out.shape == (batch_size, output_size)
    assert h1.shape == (batch_size, hidden_size)
    assert jnp.allclose(out, ref_out1[0], atol=1e-4, rtol=1e-4)
    assert jnp.allclose(h1, ref_h1, atol=1e-4, rtol=1e-4)

    ref_outs, ref_hT = rnn_reference(xs, h0, w1, b1, w2, b2)

    # ---- 2) full sequence in one grid chunk (tt = T) ----
    outs, hT = vanilla_rnn_rollout(xs, h0, params, time_chunk=8)
    jax.block_until_ready((outs, hT))
    assert jnp.allclose(outs, ref_outs, atol=1e-4, rtol=1e-4)
    assert jnp.allclose(hT, ref_hT, atol=1e-4, rtol=1e-4)

    # ---- 3) time-chunked path with padded tail (T=6, TT=4 -> 2 chunks) ----
    outs_c, hT_c = vanilla_rnn_rollout(xs, h0, params, time_chunk=4)
    jax.block_until_ready((outs_c, hT_c))
    assert jnp.allclose(outs_c, ref_outs, atol=1e-4, rtol=1e-4)
    assert jnp.allclose(hT_c, ref_hT, atol=1e-4, rtol=1e-4)

    # ---- 4) multiple batch tiles (B=16, tb=8 -> 2 tiles, per-tile h re-init) ----
    x16 = jax.random.normal(kb, (5, 16, input_size), jnp.float32)
    h016 = jax.random.normal(kh, (16, hidden_size), jnp.float32)
    outs16, hT16 = vanilla_rnn_rollout(x16, h016, params, batch_tile=8)
    jax.block_until_ready((outs16, hT16))
    ref_outs16, ref_hT16 = rnn_reference(x16, h016, w1, b1, w2, b2)
    assert jnp.allclose(outs16, ref_outs16, atol=1e-4, rtol=1e-4)
    assert jnp.allclose(hT16, ref_hT16, atol=1e-4, rtol=1e-4)

    # ---- 5) bf16 MXU path (recommended on v6e/v7x); loose tolerance ----
    params_bf16 = prepare_params(w1, b1, w2, b2, input_size,
                                 compute_dtype=jnp.bfloat16)
    outs_bf, hT_bf = vanilla_rnn_rollout(xs, h0, params_bf16, time_chunk=8)
    jax.block_until_ready((outs_bf, hT_bf))
    assert bool(jnp.all(jnp.isfinite(outs_bf))) and bool(jnp.all(jnp.isfinite(hT_bf)))
    assert jnp.allclose(outs_bf, ref_outs, atol=1e-1, rtol=1e-1)
    assert jnp.allclose(hT_bf, ref_hT, atol=1e-1, rtol=1e-1)

    print("KERNEL_OK")
</pallas_src>

<mosaic_0001>
module attributes {stable_mosaic.version = 11 : i64} {
  func.func @_rnn_kernel(%arg0: i32, %arg1: i32, %arg2: memref<1x8x32xf32, #tpu.memory_space<vmem>>, %arg3: memref<8x128xf32, #tpu.memory_space<vmem>>, %arg4: memref<32x256xf32, #tpu.memory_space<vmem>>, %arg5: memref<128x256xf32, #tpu.memory_space<vmem>>, %arg6: memref<1x256xf32, #tpu.memory_space<vmem>>, %arg7: memref<1x8x128xf32, #tpu.memory_space<vmem>>, %arg8: memref<8x128xf32, #tpu.memory_space<vmem>>, %arg9: memref<8x128xf32, #tpu.memory_space<vmem>>) attributes {dimension_semantics = [#tpu.dimension_semantics<parallel>, #tpu.dimension_semantics<arbitrary>], iteration_bounds = array<i64: 1, 1>, scalar_prefetch = 0 : i64, scratch_operands = 1 : i64, tpu.core_type = #tpu.core_type<tc>, window_params = [{transform_indices = @transform_0, window_bounds = array<i64: 1, 8, 32>}, {transform_indices = @transform_1, window_bounds = array<i64: 8, 128>}, {pipeline_mode = #tpu.pipeline_mode<synchronous>, transform_indices = @transform_2, window_bounds = array<i64: 32, 256>}, {pipeline_mode = #tpu.pipeline_mode<synchronous>, transform_indices = @transform_3, window_bounds = array<i64: 128, 256>}, {pipeline_mode = #tpu.pipeline_mode<synchronous>, transform_indices = @transform_4, window_bounds = array<i64: 1, 256>}, {transform_indices = @transform_5, window_bounds = array<i64: 1, 8, 128>}, {transform_indices = @transform_6, window_bounds = array<i64: 8, 128>}]} {
    %c0_i32 = arith.constant 0 : i32
    %0 = arith.cmpi eq, %arg1, %c0_i32 : i32
    %1 = arith.extui %0 : i1 to i32
    %c0_i32_0 = arith.constant 0 : i32
    %2 = arith.cmpi ne, %1, %c0_i32_0 : i32
    scf.if %2 {
      %c0_24 = arith.constant 0 : index
      %c0_25 = arith.constant 0 : index
      %39 = vector.load %arg3[%c0_24, %c0_25] : memref<8x128xf32, #tpu.memory_space<vmem>>, vector<8x128xf32>
      %c0_26 = arith.constant 0 : index
      %c0_27 = arith.constant 0 : index
      %40 = vector.load %arg9[%c0_26, %c0_27] : memref<8x128xf32, #tpu.memory_space<vmem>>, vector<8x128xf32>
      tpu.vector_store %arg9[%c0_26, %c0_27], %39 {strides = array<i32>} : memref<8x128xf32, #tpu.memory_space<vmem>>, vector<8x128xf32>,
    } else {
    }
    %c0 = arith.constant 0 : index
    %c0_1 = arith.constant 0 : index
    %3 = vector.load %arg4[%c0, %c0_1] : memref<32x256xf32, #tpu.memory_space<vmem>>, vector<32x256xf32>
    %c0_2 = arith.constant 0 : index
    %c0_3 = arith.constant 0 : index
    %4 = vector.load %arg5[%c0_2, %c0_3] : memref<128x256xf32, #tpu.memory_space<vmem>>, vector<128x256xf32>
    %c0_4 = arith.constant 0 : index
    %c0_5 = arith.constant 0 : index
    %5 = vector.load %arg6[%c0_4, %c0_5] : memref<1x256xf32, #tpu.memory_space<vmem>>, vector<1x256xf32>
    %6 = tpu.iota {dimensions = array<i32: 1>} : vector<8x128xi32>
    %c16_i32 = arith.constant 16 : i32
    %7 = vector.broadcast %c16_i32 : i32 to vector<8x128xi32>
    %8 = arith.cmpi slt, %6, %7 : vector<8x128xi32>
    %c0_6 = arith.constant 0 : index
    %c0_7 = arith.constant 0 : index
    %c0_8 = arith.constant 0 : index
    %9 = vector.load %arg2[%c0_6, %c0_7, %c0_8] : memref<1x8x32xf32, #tpu.memory_space<vmem>>, vector<1x8x32xf32>
    %10 = vector.shape_cast %9 : vector<1x8x32xf32> to vector<8x32xf32>
    %c0_9 = arith.constant 0 : index
    %c0_10 = arith.constant 0 : index
    %11 = vector.load %arg9[%c0_9, %c0_10] : memref<8x128xf32, #tpu.memory_space<vmem>>, vector<8x128xf32>
    %cst = arith.constant dense<0.000000e+00> : vector<8x256xf32>
    %12 = tpu.matmul %10, %3, %cst {dimension_numbers = #tpu.dot_dimension_numbers<[1], [0], [0], [1], [0, 0, 1, 1], [], []>} : vector<8x32xf32>, vector<32x256xf32>, vector<8x256xf32> -> vector<8x256xf32>
    %cst_11 = arith.constant dense<0.000000e+00> : vector<8x256xf32>
    %13 = tpu.matmul %11, %4, %cst_11 {dimension_numbers = #tpu.dot_dimension_numbers<[1], [0], [0], [1], [0, 0, 1, 1], [], []>} : vector<8x128xf32>, vector<128x256xf32>, vector<8x256xf32> -> vector<8x256xf32>
    %14 = arith.addf %12, %13 : vector<8x256xf32>
    %15 = vector.broadcast %5 : vector<1x256xf32> to vector<8x256xf32>
    %16 = arith.addf %14, %15 : vector<8x256xf32>
    %17 = vector.extract_strided_slice %16 {offsets = [0, 0], sizes = [8, 128], strides = [1, 1]} : vector<8x256xf32> to vector<8x128xf32>
    %18 = vector.extract_strided_slice %16 {offsets = [0, 128], sizes = [8, 128], strides = [1, 1]} : vector<8x256xf32> to vector<8x128xf32>
    %cst_12 = arith.constant 0xFF800000 : f32
    %19 = vector.broadcast %cst_12 : f32 to vector<8x128xf32>
    %20 = arith.select %8, %18, %19 : vector<8x128xi1>, vector<8x128xf32>
    %cst_13 = arith.constant dense<0xFF800000> : vector<8xf32>
    %21 = vector.multi_reduction <maximumf>, %20, %cst_13 [1] : vector<8x128xf32> to vector<8xf32>
    %22 = vector.shape_cast %21 : vector<8xf32> to vector<8x1xf32>
    %23 = vector.broadcast %22 : vector<8x1xf32> to vector<8x128xf32>
    %24 = arith.subf %20, %23 : vector<8x128xf32>
    %25 = math.exp %24 : vector<8x128xf32>
    %cst_14 = arith.constant dense<0.000000e+00> : vector<8xf32>
    %26 = vector.multi_reduction <add>, %25, %cst_14 [1] : vector<8x128xf32> to vector<8xf32>
    %27 = vector.shape_cast %26 : vector<8xf32> to vector<8x1xf32>
    %28 = math.log %27 : vector<8x1xf32>
    %29 = arith.addf %22, %28 : vector<8x1xf32>
    %30 = vector.broadcast %29 : vector<8x1xf32> to vector<8x128xf32>
    %31 = arith.subf %18, %30 : vector<8x128xf32>
    %c0_15 = arith.constant 0 : index
    %c0_16 = arith.constant 0 : index
    %c0_17 = arith.constant 0 : index
    %32 = vector.load %arg7[%c0_15, %c0_16, %c0_17] : memref<1x8x128xf32, #tpu.memory_space<vmem>>, vector<1x8x128xf32>
    %33 = vector.shape_cast %32 : vector<1x8x128xf32> to vector<8x128xf32>
    %34 = vector.shape_cast %31 : vector<8x128xf32> to vector<1x8x128xf32>
    tpu.vector_store %arg7[%c0_15, %c0_16, %c0_17], %34 {strides = array<i32>} : memref<1x8x128xf32, #tpu.memory_space<vmem>>, vector<1x8x128xf32>,
    %35 = math.tanh %17 : vector<8x128xf32>
    %c0_18 = arith.constant 0 : index
    %c0_19 = arith.constant 0 : index
    %36 = vector.load %arg9[%c0_18, %c0_19] : memref<8x128xf32, #tpu.memory_space<vmem>>, vector<8x128xf32>
    tpu.vector_store %arg9[%c0_18, %c0_19], %35 {strides = array<i32>} : memref<8x128xf32, #tpu.memory_space<vmem>>, vector<8x128xf32>,
    %c0_20 = arith.constant 0 : index
    %c0_21 = arith.constant 0 : index
    %37 = vector.load %arg9[%c0_20, %c0_21] : memref<8x128xf32, #tpu.memory_space<vmem>>, vector<8x128xf32>
    %c0_22 = arith.constant 0 : index
    %c0_23 = arith.constant 0 : index
    %38 = vector.load %arg8[%c0_22, %c0_23] : memref<8x128xf32, #tpu.memory_space<vmem>>, vector<8x128xf32>
    tpu.vector_store %arg8[%c0_22, %c0_23], %37 {strides = array<i32>} : memref<8x128xf32, #tpu.memory_space<vmem>>, vector<8x128xf32>,
    return
  }
  func.func @transform_0(%arg0: i32, %arg1: i32) -> (i32, i32, i32) {
    %c0_i32 = arith.constant 0 : i32
    %c0_i32_0 = arith.constant 0 : i32
    return %arg1, %arg0, %c0_i32 : i32, i32, i32
  }
  func.func @transform_1(%arg0: i32, %arg1: i32) -> (i32, i32) {
    %c0_i32 = arith.constant 0 : i32
    %c0_i32_0 = arith.constant 0 : i32
    return %arg0, %c0_i32 : i32, i32
  }
  func.func @transform_2(%arg0: i32, %arg1: i32) -> (i32, i32) {
    %c0_i32 = arith.constant 0 : i32
    %c0_i32_0 = arith.constant 0 : i32
    %c0_i32_1 = arith.constant 0 : i32
    return %c0_i32, %c0_i32_0 : i32, i32
  }
  func.func @transform_3(%arg0: i32, %arg1: i32) -> (i32, i32) {
    %c0_i32 = arith.constant 0 : i32
    %c0_i32_0 = arith.constant 0 : i32
    %c0_i32_1 = arith.constant 0 : i32
    return %c0_i32, %c0_i32_0 : i32, i32
  }
  func.func @transform_4(%arg0: i32, %arg1: i32) -> (i32, i32) {
    %c0_i32 = arith.constant 0 : i32
    %c0_i32_0 = arith.constant 0 : i32
    %c0_i32_1 = arith.constant 0 : i32
    return %c0_i32, %c0_i32_0 : i32, i32
  }
  func.func @transform_5(%arg0: i32, %arg1: i32) -> (i32, i32, i32) {
    %c0_i32 = arith.constant 0 : i32
    %c0_i32_0 = arith.constant 0 : i32
    return %arg1, %arg0, %c0_i32 : i32, i32, i32
  }
  func.func @transform_6(%arg0: i32, %arg1: i32) -> (i32, i32) {
    %c0_i32 = arith.constant 0 : i32
    %c0_i32_0 = arith.constant 0 : i32
    return %arg0, %c0_i32 : i32, i32
  }
}

</mosaic_0001>

<bundles_post_ra>
// kernel: tpu_custom_call.1
= control target key start
LH: loop header
LB: loop body
LE: loop exit
PB: predicated region body
PF: predicated region fallthrough
CT: control target
= control target key end

     0   :  { %12 = vsyncpa [#allocation4], 0  ;;  %s545_s0 = inlined_call_operand.hbm [shape: f32[1,8,32], index: 0, kind: input, shape index: {}]   ;;  %s546_s1 = inlined_call_operand.hbm [shape: f32[8,128], index: 1, kind: input, shape index: {}]   ;;  %s547_s2 = inlined_call_operand.hbm [shape: f32[32,256], index: 2, kind: input, shape index: {}]   ;;  %s548_s3 = inlined_call_operand.hbm [shape: f32[128,256], index: 3, kind: input, shape index: {}]   ;;  %s549_s4 = inlined_call_operand.vmem [shape: f32[1,256], index: 4, kind: input, shape index: {}]   ;;  %s550_s5 = inlined_call_operand.hbm [shape: f32[1,8,128], index: 5, kind: output, shape index: {0}]   ;;  %s551_s6 = inlined_call_operand.hbm [shape: f32[8,128], index: 6, kind: output, shape index: {1}]  }
   0x1   :  { %13 = vsyncpa [#allocation7], 0 }
   0x2   :  { %14 = vsyncpa [#allocation10], 0 }
   0x3   :  { %15 = vsyncpa [#allocation5], 0 }
   0x4   :  { %16 = vsyncpa [#allocation13], 0  ;;  %s480_s21 = smov [#allocation6]   ;;  %s481_s23 = smov [#allocation3]  }
   0x5   :  { %s33_s22 = sshll.u32 %s480_s21, 4  ;;  %s23_s24 = sshll.u32 %s481_s23, 4  ;;  %s34_s22 = int_to_ptr.vmem [resolvable:$true] %s33_s22  ;;  %s24_s24 = int_to_ptr.vmem [resolvable:$true] %s23_s24 }
   0x6   :  { %s358_s25 = scalar_lea.vmem %s34_s22, 128  ;;  %p363_p1 = scmp.lt.s32.totalorder %s34_s22, %s34_s22 }
   0x7   :  { %p359_p0 = scmp.ne.s32.totalorder %s34_s22, %s358_s25  ;;  %p364_p2 = scmp.lt.s32.totalorder %s358_s25, %s358_s25 }
   0x9   :  { %p365_p3 = por %p364_p2, %p363_p1 }
   0xb   :  { %p366_p4 = pnand %p365_p3, %p359_p0 }
   0xd   :  { %369 = shalt.err (!%p366_p4)
}
   0xe   :  { %36 = dma.hbm_to_vmem [thread:$0]  %s546_s1, 128, %s34_s22, [#allocation7]  }
   0xf   :  { %s378_s28 = scalar_lea.vmem %s24_s24, 128  ;;  %p383_p6 = scmp.lt.s32.totalorder %s24_s24, %s24_s24 }
  0x10   :  { %p379_p5 = scmp.ne.s32.totalorder %s24_s24, %s378_s28  ;;  %p384_p7 = scmp.lt.s32.totalorder %s378_s28, %s378_s28 }
  0x12   :  { %p385_p8 = por %p384_p7, %p383_p6 }
  0x14   :  { %p386_p9 = pnand %p385_p8, %p379_p5 }
  0x16   :  { %389 = shalt.err (!%p386_p9)
}
  0x17   :  { %26 = dma.hbm_to_vmem [thread:$0]  %s545_s0, 128, %s24_s24, [#allocation4]  }
  0x18   :  { %s482_s7 = smov [#allocation8]  }
  0x19   :  { %s42_s8 = sshll.u32 %s482_s7, 4  ;;  %s43_s8 = int_to_ptr.vmem [resolvable:$true] %s42_s8 }
  0x1a   :  { %s398_s9 = scalar_lea.vmem %s43_s8, 1024  ;;  %p403_p11 = scmp.lt.s32.totalorder %s43_s8, %s43_s8 }
  0x1b   :  { %p399_p10 = scmp.ne.s32.totalorder %s43_s8, %s398_s9  ;;  %p404_p12 = scmp.lt.s32.totalorder %s398_s9, %s398_s9 }
  0x1d   :  { %p405_p13 = por %p404_p12, %p403_p11 }
  0x1f   :  { %p406_p0 = pnand %p405_p13, %p399_p10 }
  0x21   :  { %409 = shalt.err (!%p406_p0)
}
  0x22   :  { %s483_s1 = smov 256   ;;  %s484_s10 = smov 16  }
  0x23   :  { %48 = dma.hbm_to_vmem [thread:$0]  %s547_s2, 1024, %s43_s8, [#allocation7], %s483_s1, %s483_s1, %s484_s10  }
  0x24   :  { %s485_s13 = smov [#allocation9]  }
  0x25   :  { %s54_s14 = sshll.u32 %s485_s13, 4  ;;  %s55_s14 = int_to_ptr.vmem [resolvable:$true] %s54_s14 }
  0x26   :  { %s418_s0 = scalar_lea.vmem %s55_s14, 4096  ;;  %p423_p2 = scmp.lt.s32.totalorder %s55_s14, %s55_s14 }
  0x27   :  { %p419_p1 = scmp.ne.s32.totalorder %s55_s14, %s418_s0  ;;  %p424_p3 = scmp.lt.s32.totalorder %s418_s0, %s418_s0 }
  0x29   :  { %p425_p4 = por %p424_p3, %p423_p2 }
  0x2b   :  { %p426_p5 = pnand %p425_p4, %p419_p1 }
  0x2d   :  { %429 = shalt.err (!%p426_p5)
}
  0x2e   :  { %60 = dma.hbm_to_vmem [thread:$0]  %s548_s3, 4096, %s55_s14, [#allocation10], %s483_s1, %s483_s1, %s484_s10  }
  0x2f   :  { %470 = dma.done.wait [#allocation4], 128  }
  0x30   :  { %471 = vsyncadd [#allocation4], 4294967168 }
  0x31   :  { %472 = dma.done.wait [#allocation7], 1152  }
  0x32   :  { %473 = vsyncadd [#allocation7], 4294966144 }
  0x33   :  { %474 = dma.done.wait [#allocation10], 4096  }
  0x34   :  { %475 = vsyncadd [#allocation10], 4294963200  ;;  %v486_v0 = vmov 0.0   ;;  %v120_v1 = vld [vmem:[#allocation9 + $0xf8] sm:$0xff]  ;;  %v119_v2 = vld [vmem:[#allocation9 + $0xf0] sm:$0xff]  ;;  %vm198_vm0 = vcmask 261120   ;;  %v122_v43 = vlaneseq }
  0x35   :  { %266 = vmatprep.mubr.f32.mxu1 %v486_v0  ;;  %191 = vmatprep.mubr.f32.mxu0 %v486_v0  ;;  %v118_v3 = vld [vmem:[#allocation9 + $0xe8] sm:$0xff]  ;;  %v117_v4 = vld [vmem:[#allocation9 + $0xe0] sm:$0xff]  ;;  %v116_v5 = vld [vmem:[#allocation9 + $0xd8] sm:$0xff] }
  0x36   :  { %127 = vmatprep.subr.mxu0 %v120_v1  ;;  %v115_v6 = vld [vmem:[#allocation9 + $0xd0] sm:$0xff]  ;;  %v114_v7 = vld [vmem:[#allocation9 + $0xc8] sm:$0xff]  ;;  %v113_v8 = vld [vmem:[#allocation9 + $0xc0] sm:$0xff]  ;;  %v275_v44 = vshrl.u32 %v122_v43, 7  ;;  %v123_v51 = vand.u32 127, %v122_v43 }
  0x37   :  { %128 = vmatpush1.msra.mxu0 %v119_v2  ;;  %v112_v9 = vld [vmem:[#allocation9 + $0xb8] sm:$0xff]  ;;  %v111_v10 = vld [vmem:[#allocation9 + $0xb0] sm:$0xff]  ;;  %v110_v12 = vld [vmem:[#allocation9 + $0xa8] sm:$0xff] }
  0x38   :  { %129 = vmatprep.subr.mxu0 %v118_v3  ;;  %v88_v11 = vld [vmem:[#allocation8 + $0x38] sm:$0xff]  ;;  %v87_v13 = vld [vmem:[#allocation8 + $0x30] sm:$0xff]  ;;  %v109_v14 = vld [vmem:[#allocation9 + $0xa0] sm:$0xff]  ;;  %v276_v45 = vsub.s32 0, %v275_v44  ;;  %v280_v47 = vsub.s32 1, %v275_v44  ;;  %vm124_vm1 = vcmp.lt.s32.totalorder %v123_v51, 16 }
  0x39   :  { %130 = vmatpush1.msra.mxu0 %v117_v4  ;;  %226 = vmatprep.subr.mxu1 %v88_v11  ;;  %v86_v15 = vld [vmem:[#allocation8 + $0x28] sm:$0xff]  ;;  %v85_v16 = vld [vmem:[#allocation8 + $0x20] sm:$0xff]  ;;  %v108_v17 = vld [vmem:[#allocation9 + $0x98] sm:$0xff] }
  0x3a   :  { %131 = vmatprep.subr.mxu0 %v116_v5  ;;  %227 = vmatpush1.msra.mxu1 %v87_v13  ;;  %v84_v18 = vld [vmem:[#allocation8 + $0x18] sm:$0xff]  ;;  %v107_v19 = vld [vmem:[#allocation9 + $0x90] sm:$0xff]  ;;  %v82_v21 = vld [vmem:[#allocation8 + $0x8] sm:$0xff] }
  0x3b   :  { %132 = vmatpush1.msra.mxu0 %v115_v6  ;;  %228 = vmatprep.subr.mxu1 %v86_v15  ;;  %v83_v20 = vld [vmem:[#allocation8 + $0x10] sm:$0xff]  ;;  %v106_v22 = vld [vmem:[#allocation9 + $0x88] sm:$0xff]  ;;  %v81_v23 = vld [vmem:[#allocation8] sm:$0xff] }
  0x3c   :  { %133 = vmatprep.subr.mxu0 %v114_v7  ;;  %229 = vmatpush1.msra.mxu1 %v85_v16  ;;  %v105_v24 = vld [vmem:[#allocation9 + $0x80] sm:$0xff]  ;;  %v125_v25 = vld [vmem:[#allocation3] sm:$0xff]  ;;  %v104_v26 = vld [vmem:[#allocation9 + $0x78] sm:$0xff] }
  0x3d   :  { %134 = vmatpush1.msra.mxu0 %v113_v8  ;;  %230 = vmatprep.subr.mxu1 %v84_v18  ;;  %v103_v27 = vld [vmem:[#allocation9 + $0x70] sm:$0xff]  ;;  %v102_v28 = vld [vmem:[#allocation9 + $0x68] sm:$0xff]  ;;  %v101_v29 = vld [vmem:[#allocation9 + $0x60] sm:$0xff] }
  0x3e   :  { %135 = vmatprep.subr.mxu0 %v112_v9  ;;  %231 = vmatpush1.msra.mxu1 %v83_v20  ;;  %v100_v30 = vld [vmem:[#allocation9 + $0x58] sm:$0xff]  ;;  %v99_v31 = vld [vmem:[#allocation9 + $0x50] sm:$0xff]  ;;  %v98_v32 = vld [vmem:[#allocation9 + $0x48] sm:$0xff] }
  0x3f   :  { %136 = vmatpush1.msra.mxu0 %v111_v10  ;;  %232 = vmatprep.subr.mxu1 %v82_v21  ;;  %v97_v33 = vld [vmem:[#allocation9 + $0x40] sm:$0xff]  ;;  %v96_v34 = vld [vmem:[#allocation9 + $0x38] sm:$0xff]  ;;  %v95_v35 = vld [vmem:[#allocation9 + $0x30] sm:$0xff] }
  0x40   :  { %137 = vmatprep.subr.mxu0 %v110_v12  ;;  %233 = vmatpush1.msra.mxu1 %v81_v23  ;;  %v94_v36 = vld [vmem:[#allocation9 + $0x28] sm:$0xff]  ;;  %v93_v37 = vld [vmem:[#allocation9 + $0x20] sm:$0xff]  ;;  %v92_v38 = vld [vmem:[#allocation9 + $0x18] sm:$0xff] }
  0x41   :  { %138 = vmatpush1.msra.mxu0 %v109_v14  ;;  %334 = vmatmul.mubr.msk.f32.vlgmr.msra.gmra.mxu1 %vm198_vm0, %v125_v25  ;;  %v91_v39 = vld [vmem:[#allocation9 + $0x10] sm:$0xff]  ;;  %v90_v40 = vld [vmem:[#allocation9 + $0x8] sm:$0xff]  ;;  %v89_v41 = vld [vmem:[#allocation9] sm:$0xff] }
  0x42   :  { %139 = vmatprep.subr.mxu0 %v108_v17  ;;  %v79_v42 = vld [vmem:[#allocation6] sm:$0xff]  ;;  %v121_v46 = vld [vmem:[%s549_s4] sm:$0x3]  ;;  %s487_s4 = smov [#allocation12]  }
  0x43   :  { %140 = vmatpush1.msra.mxu0 %v107_v19  ;;  %v277_v49 = vrot.slane %v121_v46, %v276_v45  ;;  %v281_v53 = vrot.slane %v121_v46, %v280_v47  ;;  %s319_s17 = sshll.u32 %s487_s4, 4  ;;  %s320_s17 = int_to_ptr.vmem [resolvable:$true] %s319_s17 }
  0x44   :  { %141 = vmatprep.subr.mxu0 %v106_v22  ;;  %s430_s18 = scalar_lea.vmem %s320_s17, 128  ;;  %p435_p7 = scmp.lt.s32.totalorder %s320_s17, %s320_s17 }
  0x45   :  { %142 = vmatpush1.msra.mxu0 %v105_v24  ;;  %p431_p6 = scmp.ne.s32.totalorder %s320_s17, %s430_s18  ;;  %p436_p8 = scmp.lt.s32.totalorder %s430_s18, %s430_s18 }
  0x46   :  { %143 = vmatprep.subr.mxu0 %v104_v26 }
  0x47   :  { %144 = vmatpush1.msra.mxu0 %v103_v27  ;;  %p437_p9 = por %p436_p8, %p435_p7 }
  0x48   :  { %145 = vmatprep.subr.mxu0 %v102_v28 }
  0x49   :  { %146 = vmatpush1.msra.mxu0 %v101_v29  ;;  %p438_p10 = pnand %p437_p9, %p431_p6 }
  0x4a   :  { %147 = vmatprep.subr.mxu0 %v100_v30 }
  0x4b   :  { %148 = vmatpush1.msra.mxu0 %v99_v31 }
  0x4c   :  { %149 = vmatprep.subr.mxu0 %v98_v32 }
  0x4d   :  { %150 = vmatpush1.msra.mxu0 %v97_v33 }
  0x4e   :  { %151 = vmatprep.subr.mxu0 %v96_v34 }
  0x4f   :  { %152 = vmatpush1.msra.mxu0 %v95_v35 }
  0x50   :  { %153 = vmatprep.subr.mxu0 %v94_v36 }
  0x51   :  { %154 = vmatpush1.msra.mxu0 %v93_v37 }
  0x52   :  { %155 = vmatprep.subr.mxu0 %v92_v38 }
  0x53   :  { %156 = vmatpush1.msra.mxu0 %v91_v39 }
  0x54   :  { %157 = vmatprep.subr.mxu0 %v90_v40 }
  0x55   :  { %158 = vmatpush1.msra.mxu0 %v89_v41 }
  0x56   :  { %192 = vmatmul.mubr.f32.vlgmr.msra.gmra.mxu0 %v79_v42 }
 0x101   :  { %v268_v48 = vpop.f32.mrf.mxu1 }
 0x103   :  { %v270_v54 = vpop.f32.mrf.mxu1 }
 0x116   :  { %v193_v50 = vpop.f32.mrf.mxu0 }
 0x117   :  { %v269_v52 = vadd.f32 %v268_v48, %v193_v50 }
 0x118   :  { %v195_v55 = vpop.f32.mrf.mxu0 }
 0x119   :  { %v284_v56 = vadd.f32 %v277_v49, %v269_v52  ;;  %v271_v57 = vadd.f32 %v270_v54, %v195_v55 }
 0x11b   :  { %344 = vtanh.f32 %v284_v56  ;;  %v285_v58 = vadd.f32 %v281_v53, %v271_v57 }
 0x11d   :  { %v286_v59 = vsel %vm124_vm1, %v285_v58, -inf }
 0x11e   :  { %287 = vmax.xlane.f32.xlu0 %v286_v59 }
 0x128   :  { %v345_v60 = vpop.eup %344 }
 0x129   :  { %302 = vst [vmem:[#allocation12] sm:$0xff] %v345_v60 }
 0x1a7   :  { %v288_v61 = vpop.xlane.xlu0 %287 }
 0x1a8   :  { %v289_v62 = vsub.f32 %v286_v59, %v288_v61 }
 0x1aa   :  { %v290_v63 = vmul.f32 1.442695, %v289_v62 }
 0x1ac   :  { %346 = vpow2.f32 %v290_v63 }
 0x1b9   :  { %v347_v0 = vpop.eup %346 }
 0x1ba   :  { %292 = vadd.xlane.f32.xlu0 %v347_v0 }
 0x1bb   :  { %441 = shalt.err (!%p438_p10)
}
 0x1bc   :  { %322 = dma.vmem_to_hbm [thread:$0]  %s320_s17, 128, %s551_s6, [#allocation13]  }
 0x1bd   :  { %s488_s21 = smov [#allocation11]  }
 0x1be   :  { %s309_s22 = sshll.u32 %s488_s21, 4  ;;  %s310_s22 = int_to_ptr.vmem [resolvable:$true] %s309_s22 }
 0x1bf   :  { %s450_s23 = scalar_lea.vmem %s310_s22, 128  ;;  %p455_p12 = scmp.lt.s32.totalorder %s310_s22, %s310_s22 }
 0x1c0   :  { %p451_p11 = scmp.ne.s32.totalorder %s310_s22, %s450_s23  ;;  %p456_p13 = scmp.lt.s32.totalorder %s450_s23, %s450_s23 }
 0x1c2   :  { %p457_p0 = por %p456_p13, %p455_p12 }
 0x1c4   :  { %p458_p1 = pnand %p457_p0, %p451_p11 }
 0x243   :  { %v293_v1 = vpop.xlane.xlu0 %292 }
 0x244   :  { %348 = vlog2.f32 %v293_v1 }
 0x251   :  { %v349_v2 = vpop.eup %348 }
 0x252   :  { %v295_v3 = vmul.f32 0.6931472, %v349_v2 }
 0x254   :  { %v296_v4 = vadd.f32 %v295_v3, %v288_v61 }
 0x256   :  { %v297_v5 = vsub.f32 %v285_v58, %v296_v4 }
 0x258   :  { %298 = vst [vmem:[#allocation11] sm:$0xff] %v297_v5 }
 0x259   :  { %461 = shalt.err (!%p458_p1)
}
 0x25a   :  { %312 = dma.vmem_to_hbm [thread:$0]  %s310_s22, 128, %s550_s5, [#allocation5]  }
 0x25b   :  { %476 = dma.done.wait [#allocation5], 128  }
 0x25c   :  { %477 = vsyncadd [#allocation5], 4294967168 }
 0x25d   :  { %478 = dma.done.wait [#allocation13], 128  }
 0x25e   :  { %479 = vsyncadd [#allocation13], 4294967168 }
 0x25f   :  { %329 = vsyncpa [#allocation4], 1 }
 0x260   :  { %330 = vsyncpa [#allocation7], 1 }
 0x261   :  { %331 = vsyncpa [#allocation10], 1 }
 0x262   :  { %332 = vsyncpa [#allocation5], 1 }
 0x263   :  { %333 = vsyncpa [#allocation13], 1 }

</bundles_post_ra>
